<compile_context>
chip_gen: v5e
topology: v5e:2x2
jax: 0.10.0
libtpu: 0.0.40
codegen_flags: <defaults>
</compile_context>

<pallas_src>
import functools
import math

import jax
import jax.numpy as jnp
from jax.experimental import pallas as pl
from jax.experimental.pallas import tpu as pltpu


def _attn_fusion_kernel(n_head, d_k, d_v, compute_dtype,
                        mask_ref, x_ref, xf_ref,
                        wq_ref, wk_ref, wv_ref, wvf_ref, wfc_ref,
                        ln1g_ref, ln1b_ref,
                        w1_ref, b1_ref, w2_ref, b2_ref,
                        ln2g_ref, ln2b_ref,
                        out_ref,
                        attn_scratch):
    TB, L, D = x_ref.shape
    M = TB * L

    # Flatten (TB, L, D) -> (TB*L, D): every projection / FFN / LayerNorm matmul
    # sees M = TB*L rows instead of L (much better MXU row utilization).
    x32 = x_ref[...].reshape(M, D)                      # f32 copy kept for residual
    x = x32.astype(compute_dtype)
    xf = xf_ref[...].reshape(M, D).astype(compute_dtype)

    # --- fused Q/K/V projections (full-D contraction, bf16 operands, f32 acc) ---
    q = jnp.dot(x, wq_ref[...], preferred_element_type=jnp.float32)      # (M, H*dk)
    k = jnp.dot(xf, wk_ref[...], preferred_element_type=jnp.float32)     # (M, H*dk)
    v = (jnp.dot(x, wv_ref[...], preferred_element_type=jnp.float32) +
         jnp.dot(xf, wvf_ref[...], preferred_element_type=jnp.float32))  # (M, H*dv)

    # Fold 1/sqrt(d_k) into q once (cheaper than scaling every (L, L) score tile).
    q = q * (1.0 / math.sqrt(d_k))

    q = q.reshape(TB, L, n_head * d_k).astype(compute_dtype)
    k = k.reshape(TB, L, n_head * d_k).astype(compute_dtype)
    v = v.reshape(TB, L, n_head * d_v).astype(compute_dtype)

    # Additive pad-mask bias built in-kernel from the (TB, 1, L) int mask;
    # broadcast once (hoisted out of the head loop), kept in f32.
    bias = jnp.where(mask_ref[...] == 0, -1e9, 0.0).astype(jnp.float32)   # (TB,1,L)
    bias = jnp.broadcast_to(bias, (TB, L, L))

    # --- per-head attention, batched over the TB batch rows via einsum ---
    # (heads stay as static unrolled lane slices; each head's output goes
    #  straight into the VMEM scratch slab instead of a vreg-level concat)
    for h in range(n_head):
        qh = q[:, :, h * d_k:(h + 1) * d_k]                               # (TB,L,dk)
        kh = k[:, :, h * d_k:(h + 1) * d_k]
        vh = v[:, :, h * d_v:(h + 1) * d_v]
        s = jnp.einsum("bqd,bkd->bqk", qh, kh,
                       preferred_element_type=jnp.float32) + bias         # (TB,L,L)
        m = jnp.max(s, axis=-1, keepdims=True)
        p = jnp.exp(s - m)
        p = p * pl.reciprocal(jnp.sum(p, axis=-1, keepdims=True), approx=True)
        oh = jnp.einsum("bqk,bkd->bqd", p.astype(compute_dtype), vh,
                        preferred_element_type=jnp.float32)               # (TB,L,dv)
        attn_scratch[:, h * d_v:(h + 1) * d_v] = (
            oh.reshape(M, d_v).astype(compute_dtype))

    # --- output projection + residual(q input) + LayerNorm (f32) ---
    o = jnp.dot(attn_scratch[...], wfc_ref[...],
                preferred_element_type=jnp.float32)                       # (M, D)
    o = o + x32
    mu = jnp.mean(o, axis=-1, keepdims=True)
    var = jnp.mean((o - mu) ** 2, axis=-1, keepdims=True)
    o = (o - mu) * jax.lax.rsqrt(var + 1e-6) * ln1g_ref[...] + ln1b_ref[...]

    # --- position-wise feed forward + residual + LayerNorm (f32) ---
    h1 = jnp.dot(o.astype(compute_dtype), w1_ref[...],
                 preferred_element_type=jnp.float32) + b1_ref[...]
    h1 = jnp.maximum(h1, 0.0)
    h2 = jnp.dot(h1.astype(compute_dtype), w2_ref[...],
                 preferred_element_type=jnp.float32) + b2_ref[...]
    y = h2 + o
    mu2 = jnp.mean(y, axis=-1, keepdims=True)
    var2 = jnp.mean((y - mu2) ** 2, axis=-1, keepdims=True)
    y = (y - mu2) * jax.lax.rsqrt(var2 + 1e-6) * ln2g_ref[...] + ln2b_ref[...]

    out_ref[...] = y.reshape(TB, L, D).astype(out_ref.dtype)


def _pick_batch_block(B, L, target_rows=256, max_rows=2048):
    """Largest divisor TB of B with TB*L <= max_rows, stopping as soon as
    TB*L >= target_rows (fills the MXU while keeping the grid long)."""
    best = 1
    for tb in range(1, B + 1):
        if B % tb != 0:
            continue
        if tb * L > max_rows:
            break
        best = tb
        if tb * L >= target_rows:
            break
    return best


def attn_fusion(enc, enc_f, src_mask, params, *, n_head, d_k, d_v,
                compute_dtype=jnp.bfloat16):
    """enc, enc_f: (B, L, D) float32; src_mask: (B, L) int (1=valid, 0=pad)."""
    B, L, D = enc.shape
    TB = _pick_batch_block(B, L)
    grid = (B // TB,)

    # Pad mask stays tiny: (B, 1, L) int32; the -1e9 bias is built in-kernel.
    mask = src_mask.astype(jnp.int32).reshape(B, 1, L)

    # Weights in compute dtype (bf16): halves weight DMA bytes + VMEM footprint.
    weights = {name: params[name].astype(compute_dtype)
               for name in ("wq", "wk", "wv", "wvf", "wfc", "w1", "w2")}

    seq_spec = pl.BlockSpec((TB, L, D), lambda b: (b, 0, 0))
    mask_spec = pl.BlockSpec((TB, 1, L), lambda b: (b, 0, 0))

    def full_spec(shape):
        n = len(shape)
        return pl.BlockSpec(shape, lambda b: (0,) * n)

    in_specs = [
        mask_spec, seq_spec, seq_spec,
        full_spec(weights["wq"].shape), full_spec(weights["wk"].shape),
        full_spec(weights["wv"].shape), full_spec(weights["wvf"].shape),
        full_spec(weights["wfc"].shape),
        full_spec(params["ln1_g"].shape), full_spec(params["ln1_b"].shape),
        full_spec(weights["w1"].shape), full_spec(params["b1"].shape),
        full_spec(weights["w2"].shape), full_spec(params["b2"].shape),
        full_spec(params["ln2_g"].shape), full_spec(params["ln2_b"].shape),
    ]

    kernel = functools.partial(_attn_fusion_kernel, n_head, d_k, d_v, compute_dtype)

    return pl.pallas_call(
        kernel,
        out_shape=jax.ShapeDtypeStruct((B, L, D), jnp.float32),
        grid_spec=pltpu.PrefetchScalarGridSpec(
            num_scalar_prefetch=0,
            grid=grid,
            in_specs=in_specs,
            out_specs=pl.BlockSpec((TB, L, D), lambda b: (b, 0, 0)),
            scratch_shapes=[pltpu.VMEM((TB * L, n_head * d_v), compute_dtype)],
        ),
        compiler_params=pltpu.CompilerParams(
            dimension_semantics=("parallel",),
            vmem_limit_bytes=48 * 1024 * 1024,
        ),
    )(mask, enc, enc_f,
      weights["wq"], weights["wk"], weights["wv"], weights["wvf"], weights["wfc"],
      params["ln1_g"], params["ln1_b"],
      weights["w1"], params["b1"], weights["w2"], params["b2"],
      params["ln2_g"], params["ln2_b"])


def reference_jax(enc, enc_f, src_mask, params, *, n_head, d_k, d_v):
    """Pure-JAX f32 reference of the same forward pass (for verification)."""
    B, L, D = enc.shape
    bias = jnp.where(src_mask[:, None, :] == 0, -1e9, 0.0)
    q = enc @ params["wq"]
    k = enc_f @ params["wk"]
    v = enc @ params["wv"] + enc_f @ params["wvf"]

    def split(t, dh):
        return t.reshape(B, L, n_head, dh).transpose(0, 2, 1, 3)  # (B,H,L,dh)

    qh, kh, vh = split(q, d_k), split(k, d_k), split(v, d_v)
    s = jnp.einsum("bhid,bhjd->bhij", qh, kh) / math.sqrt(d_k) + bias[:, None]
    p = jax.nn.softmax(s, axis=-1)
    o = jnp.einsum("bhij,bhjd->bhid", p, vh).transpose(0, 2, 1, 3).reshape(
        B, L, n_head * d_v)
    o = o @ params["wfc"] + enc

    def ln(x, g, b):
        mu = x.mean(-1, keepdims=True)
        var = ((x - mu) ** 2).mean(-1, keepdims=True)
        return (x - mu) / jnp.sqrt(var + 1e-6) * g + b

    o = ln(o, params["ln1_g"][0], params["ln1_b"][0])
    h = jax.nn.relu(o @ params["w1"] + params["b1"][0])
    y = h @ params["w2"] + params["b2"][0] + o
    return ln(y, params["ln2_g"][0], params["ln2_b"][0])


def init_params(key, d_model, n_head, d_k, d_v, ffd_expansion_factor):
    d_hid = ffd_expansion_factor * d_model
    ks = jax.random.split(key, 7)
    std = 0.1

    def w(k, shape):
        return (std * jax.random.normal(k, shape)).astype(jnp.float32)

    return {
        "wq": w(ks[0], (d_model, n_head * d_k)),
        "wk": w(ks[1], (d_model, n_head * d_k)),
        "wv": w(ks[2], (d_model, n_head * d_v)),
        "wvf": w(ks[3], (d_model, n_head * d_v)),
        "wfc": w(ks[4], (n_head * d_v, d_model)),
        "ln1_g": jnp.ones((1, d_model), jnp.float32),   # torch LayerNorm default init
        "ln1_b": jnp.zeros((1, d_model), jnp.float32),
        "w1": w(ks[5], (d_model, d_hid)),
        "b1": jnp.zeros((1, d_hid), jnp.float32),
        "w2": w(ks[6], (d_hid, d_model)),
        "b2": jnp.zeros((1, d_model), jnp.float32),
        "ln2_g": jnp.ones((1, d_model), jnp.float32),
        "ln2_b": jnp.zeros((1, d_model), jnp.float32),
    }


if __name__ == "__main__":
    B, L, D = 2, 8, 32
    n_head, d_k, d_v, ffd_expansion = 2, 16, 16, 2

    key = jax.random.PRNGKey(0)
    k1, k2, kp = jax.random.split(key, 3)
    enc = jax.random.normal(k1, (B, L, D), jnp.float32)
    enc_f = jax.random.normal(k2, (B, L, D), jnp.float32)
    # src_mask: last two positions of batch 1 are padding.
    src_mask = jnp.array([[1] * L, [1] * (L - 2) + [0, 0]], jnp.int32)

    params = init_params(kp, D, n_head, d_k, d_v, ffd_expansion)

    out = attn_fusion(enc, enc_f, src_mask, params, n_head=n_head, d_k=d_k, d_v=d_v)
    out = jax.block_until_ready(out)

    ref = reference_jax(enc, enc_f, src_mask, params, n_head=n_head, d_k=d_k, d_v=d_v)
    assert out.shape == (B, L, D)
    # bf16 MXU operands with f32 accumulation + approx softmax reciprocal
    # vs. a pure-f32 reference -> relaxed tolerance.
    assert jnp.allclose(out, ref, atol=5e-2, rtol=5e-2), "mismatch vs JAX reference"

    print("KERNEL_OK")
</pallas_src>

<mosaic_0001>
module attributes {stable_mosaic.version = 11 : i64} {
  func.func @_attn_fusion_kernel(%arg0: i32, %arg1: memref<2x1x8xi32, #tpu.memory_space<vmem>>, %arg2: memref<2x8x32xf32, #tpu.memory_space<vmem>>, %arg3: memref<2x8x32xf32, #tpu.memory_space<vmem>>, %arg4: memref<32x32xbf16, #tpu.memory_space<vmem>>, %arg5: memref<32x32xbf16, #tpu.memory_space<vmem>>, %arg6: memref<32x32xbf16, #tpu.memory_space<vmem>>, %arg7: memref<32x32xbf16, #tpu.memory_space<vmem>>, %arg8: memref<32x32xbf16, #tpu.memory_space<vmem>>, %arg9: memref<1x32xf32, #tpu.memory_space<vmem>>, %arg10: memref<1x32xf32, #tpu.memory_space<vmem>>, %arg11: memref<32x64xbf16, #tpu.memory_space<vmem>>, %arg12: memref<1x64xf32, #tpu.memory_space<vmem>>, %arg13: memref<64x32xbf16, #tpu.memory_space<vmem>>, %arg14: memref<1x32xf32, #tpu.memory_space<vmem>>, %arg15: memref<1x32xf32, #tpu.memory_space<vmem>>, %arg16: memref<1x32xf32, #tpu.memory_space<vmem>>, %arg17: memref<2x8x32xf32, #tpu.memory_space<vmem>>, %arg18: memref<16x32xbf16, #tpu.memory_space<vmem>>) attributes {dimension_semantics = [#tpu.dimension_semantics<parallel>], iteration_bounds = array<i64: 1>, scalar_prefetch = 0 : i64, scratch_operands = 1 : i64, tpu.core_type = #tpu.core_type<tc>, window_params = [{transform_indices = @transform_0, window_bounds = array<i64: 2, 1, 8>}, {transform_indices = @transform_1, window_bounds = array<i64: 2, 8, 32>}, {transform_indices = @transform_2, window_bounds = array<i64: 2, 8, 32>}, {pipeline_mode = #tpu.pipeline_mode<synchronous>, transform_indices = @transform_3, window_bounds = array<i64: 32, 32>}, {pipeline_mode = #tpu.pipeline_mode<synchronous>, transform_indices = @transform_4, window_bounds = array<i64: 32, 32>}, {pipeline_mode = #tpu.pipeline_mode<synchronous>, transform_indices = @transform_5, window_bounds = array<i64: 32, 32>}, {pipeline_mode = #tpu.pipeline_mode<synchronous>, transform_indices = @transform_6, window_bounds = array<i64: 32, 32>}, {pipeline_mode = #tpu.pipeline_mode<synchronous>, transform_indices = @transform_7, window_bounds = array<i64: 32, 32>}, {pipeline_mode = #tpu.pipeline_mode<synchronous>, transform_indices = @transform_8, window_bounds = array<i64: 1, 32>}, {pipeline_mode = #tpu.pipeline_mode<synchronous>, transform_indices = @transform_9, window_bounds = array<i64: 1, 32>}, {pipeline_mode = #tpu.pipeline_mode<synchronous>, transform_indices = @transform_10, window_bounds = array<i64: 32, 64>}, {pipeline_mode = #tpu.pipeline_mode<synchronous>, transform_indices = @transform_11, window_bounds = array<i64: 1, 64>}, {pipeline_mode = #tpu.pipeline_mode<synchronous>, transform_indices = @transform_12, window_bounds = array<i64: 64, 32>}, {pipeline_mode = #tpu.pipeline_mode<synchronous>, transform_indices = @transform_13, window_bounds = array<i64: 1, 32>}, {pipeline_mode = #tpu.pipeline_mode<synchronous>, transform_indices = @transform_14, window_bounds = array<i64: 1, 32>}, {pipeline_mode = #tpu.pipeline_mode<synchronous>, transform_indices = @transform_15, window_bounds = array<i64: 1, 32>}, {transform_indices = @transform_16, window_bounds = array<i64: 2, 8, 32>}]} {
    %c0 = arith.constant 0 : index
    %c0_0 = arith.constant 0 : index
    %c0_1 = arith.constant 0 : index
    %0 = vector.load %arg2[%c0, %c0_0, %c0_1] : memref<2x8x32xf32, #tpu.memory_space<vmem>>, vector<2x8x32xf32>
    %1 = vector.shape_cast %0 : vector<2x8x32xf32> to vector<16x32xf32>
    %2 = arith.truncf %1 : vector<16x32xf32> to vector<16x32xbf16>
    %c0_2 = arith.constant 0 : index
    %c0_3 = arith.constant 0 : index
    %c0_4 = arith.constant 0 : index
    %3 = vector.load %arg3[%c0_2, %c0_3, %c0_4] : memref<2x8x32xf32, #tpu.memory_space<vmem>>, vector<2x8x32xf32>
    %4 = vector.shape_cast %3 : vector<2x8x32xf32> to vector<16x32xf32>
    %5 = arith.truncf %4 : vector<16x32xf32> to vector<16x32xbf16>
    %c0_5 = arith.constant 0 : index
    %c0_6 = arith.constant 0 : index
    %6 = vector.load %arg4[%c0_5, %c0_6] : memref<32x32xbf16, #tpu.memory_space<vmem>>, vector<32x32xbf16>
    %cst = arith.constant dense<0.000000e+00> : vector<16x32xf32>
    %7 = tpu.matmul %2, %6, %cst {dimension_numbers = #tpu.dot_dimension_numbers<[1], [0], [0], [1], [0, 0, 1, 1], [], []>} : vector<16x32xbf16>, vector<32x32xbf16>, vector<16x32xf32> -> vector<16x32xf32>
    %c0_7 = arith.constant 0 : index
    %c0_8 = arith.constant 0 : index
    %8 = vector.load %arg5[%c0_7, %c0_8] : memref<32x32xbf16, #tpu.memory_space<vmem>>, vector<32x32xbf16>
    %cst_9 = arith.constant dense<0.000000e+00> : vector<16x32xf32>
    %9 = tpu.matmul %5, %8, %cst_9 {dimension_numbers = #tpu.dot_dimension_numbers<[1], [0], [0], [1], [0, 0, 1, 1], [], []>} : vector<16x32xbf16>, vector<32x32xbf16>, vector<16x32xf32> -> vector<16x32xf32>
    %c0_10 = arith.constant 0 : index
    %c0_11 = arith.constant 0 : index
    %10 = vector.load %arg6[%c0_10, %c0_11] : memref<32x32xbf16, #tpu.memory_space<vmem>>, vector<32x32xbf16>
    %cst_12 = arith.constant dense<0.000000e+00> : vector<16x32xf32>
    %11 = tpu.matmul %2, %10, %cst_12 {dimension_numbers = #tpu.dot_dimension_numbers<[1], [0], [0], [1], [0, 0, 1, 1], [], []>} : vector<16x32xbf16>, vector<32x32xbf16>, vector<16x32xf32> -> vector<16x32xf32>
    %c0_13 = arith.constant 0 : index
    %c0_14 = arith.constant 0 : index
    %12 = vector.load %arg7[%c0_13, %c0_14] : memref<32x32xbf16, #tpu.memory_space<vmem>>, vector<32x32xbf16>
    %cst_15 = arith.constant dense<0.000000e+00> : vector<16x32xf32>
    %13 = tpu.matmul %5, %12, %cst_15 {dimension_numbers = #tpu.dot_dimension_numbers<[1], [0], [0], [1], [0, 0, 1, 1], [], []>} : vector<16x32xbf16>, vector<32x32xbf16>, vector<16x32xf32> -> vector<16x32xf32>
    %14 = arith.addf %11, %13 : vector<16x32xf32>
    %cst_16 = arith.constant 2.500000e-01 : f32
    %15 = vector.broadcast %cst_16 : f32 to vector<16x32xf32>
    %16 = arith.mulf %7, %15 : vector<16x32xf32>
    %17 = vector.shape_cast %16 : vector<16x32xf32> to vector<2x8x32xf32>
    %18 = arith.truncf %17 : vector<2x8x32xf32> to vector<2x8x32xbf16>
    %19 = vector.shape_cast %9 : vector<16x32xf32> to vector<2x8x32xf32>
    %20 = arith.truncf %19 : vector<2x8x32xf32> to vector<2x8x32xbf16>
    %21 = vector.shape_cast %14 : vector<16x32xf32> to vector<2x8x32xf32>
    %22 = arith.truncf %21 : vector<2x8x32xf32> to vector<2x8x32xbf16>
    %c0_17 = arith.constant 0 : index
    %c0_18 = arith.constant 0 : index
    %c0_19 = arith.constant 0 : index
    %23 = vector.load %arg1[%c0_17, %c0_18, %c0_19] : memref<2x1x8xi32, #tpu.memory_space<vmem>>, vector<2x1x8xi32>
    %c0_i32 = arith.constant 0 : i32
    %24 = vector.broadcast %c0_i32 : i32 to vector<2x1x8xi32>
    %25 = arith.cmpi eq, %23, %24 : vector<2x1x8xi32>
    %cst_20 = arith.constant -1.000000e+09 : f32
    %cst_21 = arith.constant 0.000000e+00 : f32
    %26 = vector.broadcast %cst_20 : f32 to vector<2x1x8xf32>
    %27 = vector.broadcast %cst_21 : f32 to vector<2x1x8xf32>
    %28 = arith.select %25, %26, %27 : vector<2x1x8xi1>, vector<2x1x8xf32>
    %29 = vector.shape_cast %28 : vector<2x1x8xf32> to vector<2x1x8xf32>
    %30 = vector.broadcast %29 : vector<2x1x8xf32> to vector<2x8x8xf32>
    %31 = vector.extract_strided_slice %18 {offsets = [0, 0, 0], sizes = [2, 8, 16], strides = [1, 1, 1]} : vector<2x8x32xbf16> to vector<2x8x16xbf16>
    %32 = vector.extract_strided_slice %20 {offsets = [0, 0, 0], sizes = [2, 8, 16], strides = [1, 1, 1]} : vector<2x8x32xbf16> to vector<2x8x16xbf16>
    %33 = vector.extract_strided_slice %22 {offsets = [0, 0, 0], sizes = [2, 8, 16], strides = [1, 1, 1]} : vector<2x8x32xbf16> to vector<2x8x16xbf16>
    "tpu.trace_start"() <{level = 10 : i32, message = "bqd,bkd->bqk"}> : () -> ()
    %cst_22 = arith.constant dense<0.000000e+00> : vector<2x8x8xf32>
    %34 = tpu.matmul %31, %32, %cst_22 {dimension_numbers = #tpu.dot_dimension_numbers<[2], [2], [1], [1], [0, 0, 0, 1, 1, 1], [0], [0]>} : vector<2x8x16xbf16>, vector<2x8x16xbf16>, vector<2x8x8xf32> -> vector<2x8x8xf32>
    "tpu.trace_stop"() : () -> ()
    %35 = arith.addf %34, %30 : vector<2x8x8xf32>
    %cst_23 = arith.constant dense<0xFF800000> : vector<2x8xf32>
    %36 = vector.multi_reduction <maximumf>, %35, %cst_23 [2] : vector<2x8x8xf32> to vector<2x8xf32>
    %37 = vector.shape_cast %36 : vector<2x8xf32> to vector<2x8x1xf32>
    %38 = vector.broadcast %37 : vector<2x8x1xf32> to vector<2x8x8xf32>
    %39 = arith.subf %35, %38 : vector<2x8x8xf32>
    %40 = math.exp %39 : vector<2x8x8xf32>
    %cst_24 = arith.constant dense<0.000000e+00> : vector<2x8xf32>
    %41 = vector.multi_reduction <add>, %40, %cst_24 [2] : vector<2x8x8xf32> to vector<2x8xf32>
    %42 = vector.shape_cast %41 : vector<2x8xf32> to vector<2x8x1xf32>
    %43 = tpu.reciprocal %42 {approx = true} : vector<2x8x1xf32> -> vector<2x8x1xf32>
    %44 = vector.broadcast %43 : vector<2x8x1xf32> to vector<2x8x8xf32>
    %45 = arith.mulf %40, %44 : vector<2x8x8xf32>
    %46 = arith.truncf %45 : vector<2x8x8xf32> to vector<2x8x8xbf16>
    "tpu.trace_start"() <{level = 10 : i32, message = "bqk,bkd->bqd"}> : () -> ()
    %cst_25 = arith.constant dense<0.000000e+00> : vector<2x8x16xf32>
    %47 = tpu.matmul %46, %33, %cst_25 {dimension_numbers = #tpu.dot_dimension_numbers<[2], [1], [1], [2], [0, 0, 0, 1, 1, 2], [0], [0]>} : vector<2x8x8xbf16>, vector<2x8x16xbf16>, vector<2x8x16xf32> -> vector<2x8x16xf32>
    "tpu.trace_stop"() : () -> ()
    %48 = vector.shape_cast %47 : vector<2x8x16xf32> to vector<16x16xf32>
    %49 = arith.truncf %48 : vector<16x16xf32> to vector<16x16xbf16>
    %c0_26 = arith.constant 0 : index
    %c0_27 = arith.constant 0 : index
    %50 = vector.load %arg18[%c0_26, %c0_27] : memref<16x32xbf16, #tpu.memory_space<vmem>>, vector<16x16xbf16>
    tpu.vector_store %arg18[%c0_26, %c0_27], %49 {strides = array<i32>} : memref<16x32xbf16, #tpu.memory_space<vmem>>, vector<16x16xbf16>,
    %51 = vector.extract_strided_slice %18 {offsets = [0, 0, 16], sizes = [2, 8, 16], strides = [1, 1, 1]} : vector<2x8x32xbf16> to vector<2x8x16xbf16>
    %52 = vector.extract_strided_slice %20 {offsets = [0, 0, 16], sizes = [2, 8, 16], strides = [1, 1, 1]} : vector<2x8x32xbf16> to vector<2x8x16xbf16>
    %53 = vector.extract_strided_slice %22 {offsets = [0, 0, 16], sizes = [2, 8, 16], strides = [1, 1, 1]} : vector<2x8x32xbf16> to vector<2x8x16xbf16>
    "tpu.trace_start"() <{level = 10 : i32, message = "bqd,bkd->bqk"}> : () -> ()
    %cst_28 = arith.constant dense<0.000000e+00> : vector<2x8x8xf32>
    %54 = tpu.matmul %51, %52, %cst_28 {dimension_numbers = #tpu.dot_dimension_numbers<[2], [2], [1], [1], [0, 0, 0, 1, 1, 1], [0], [0]>} : vector<2x8x16xbf16>, vector<2x8x16xbf16>, vector<2x8x8xf32> -> vector<2x8x8xf32>
    "tpu.trace_stop"() : () -> ()
    %55 = arith.addf %54, %30 : vector<2x8x8xf32>
    %cst_29 = arith.constant dense<0xFF800000> : vector<2x8xf32>
    %56 = vector.multi_reduction <maximumf>, %55, %cst_29 [2] : vector<2x8x8xf32> to vector<2x8xf32>
    %57 = vector.shape_cast %56 : vector<2x8xf32> to vector<2x8x1xf32>
    %58 = vector.broadcast %57 : vector<2x8x1xf32> to vector<2x8x8xf32>
    %59 = arith.subf %55, %58 : vector<2x8x8xf32>
    %60 = math.exp %59 : vector<2x8x8xf32>
    %cst_30 = arith.constant dense<0.000000e+00> : vector<2x8xf32>
    %61 = vector.multi_reduction <add>, %60, %cst_30 [2] : vector<2x8x8xf32> to vector<2x8xf32>
    %62 = vector.shape_cast %61 : vector<2x8xf32> to vector<2x8x1xf32>
    %63 = tpu.reciprocal %62 {approx = true} : vector<2x8x1xf32> -> vector<2x8x1xf32>
    %64 = vector.broadcast %63 : vector<2x8x1xf32> to vector<2x8x8xf32>
    %65 = arith.mulf %60, %64 : vector<2x8x8xf32>
    %66 = arith.truncf %65 : vector<2x8x8xf32> to vector<2x8x8xbf16>
    "tpu.trace_start"() <{level = 10 : i32, message = "bqk,bkd->bqd"}> : () -> ()
    %cst_31 = arith.constant dense<0.000000e+00> : vector<2x8x16xf32>
    %67 = tpu.matmul %66, %53, %cst_31 {dimension_numbers = #tpu.dot_dimension_numbers<[2], [1], [1], [2], [0, 0, 0, 1, 1, 2], [0], [0]>} : vector<2x8x8xbf16>, vector<2x8x16xbf16>, vector<2x8x16xf32> -> vector<2x8x16xf32>
    "tpu.trace_stop"() : () -> ()
    %68 = vector.shape_cast %67 : vector<2x8x16xf32> to vector<16x16xf32>
    %69 = arith.truncf %68 : vector<16x16xf32> to vector<16x16xbf16>
    %c0_32 = arith.constant 0 : index
    %c16 = arith.constant 16 : index
    %70 = vector.load %arg18[%c0_32, %c16] : memref<16x32xbf16, #tpu.memory_space<vmem>>, vector<16x16xbf16>
    tpu.vector_store %arg18[%c0_32, %c16], %69 {strides = array<i32>} : memref<16x32xbf16, #tpu.memory_space<vmem>>, vector<16x16xbf16>,
    %c0_33 = arith.constant 0 : index
    %c0_34 = arith.constant 0 : index
    %71 = vector.load %arg18[%c0_33, %c0_34] : memref<16x32xbf16, #tpu.memory_space<vmem>>, vector<16x32xbf16>
    %c0_35 = arith.constant 0 : index
    %c0_36 = arith.constant 0 : index
    %72 = vector.load %arg8[%c0_35, %c0_36] : memref<32x32xbf16, #tpu.memory_space<vmem>>, vector<32x32xbf16>
    %cst_37 = arith.constant dense<0.000000e+00> : vector<16x32xf32>
    %73 = tpu.matmul %71, %72, %cst_37 {dimension_numbers = #tpu.dot_dimension_numbers<[1], [0], [0], [1], [0, 0, 1, 1], [], []>} : vector<16x32xbf16>, vector<32x32xbf16>, vector<16x32xf32> -> vector<16x32xf32>
    %74 = arith.addf %73, %1 : vector<16x32xf32>
    %cst_38 = arith.constant dense<0.000000e+00> : vector<16xf32>
    %75 = vector.multi_reduction <add>, %74, %cst_38 [1] : vector<16x32xf32> to vector<16xf32>
    %76 = vector.shape_cast %75 : vector<16xf32> to vector<16x1xf32>
    %cst_39 = arith.constant 3.200000e+01 : f32
    %77 = vector.broadcast %cst_39 : f32 to vector<16x1xf32>
    %78 = arith.divf %76, %77 : vector<16x1xf32>
    %79 = vector.broadcast %78 : vector<16x1xf32> to vector<16x32xf32>
    %80 = arith.subf %74, %79 : vector<16x32xf32>
    %81 = arith.mulf %80, %80 : vector<16x32xf32>
    %cst_40 = arith.constant dense<0.000000e+00> : vector<16xf32>
    %82 = vector.multi_reduction <add>, %81, %cst_40 [1] : vector<16x32xf32> to vector<16xf32>
    %83 = vector.shape_cast %82 : vector<16xf32> to vector<16x1xf32>
    %cst_41 = arith.constant 3.200000e+01 : f32
    %84 = vector.broadcast %cst_41 : f32 to vector<16x1xf32>
    %85 = arith.divf %83, %84 : vector<16x1xf32>
    %86 = vector.broadcast %78 : vector<16x1xf32> to vector<16x32xf32>
    %87 = arith.subf %74, %86 : vector<16x32xf32>
    %cst_42 = arith.constant 9.99999997E-7 : f32
    %88 = vector.broadcast %cst_42 : f32 to vector<16x1xf32>
    %89 = arith.addf %85, %88 : vector<16x1xf32>
    %90 = math.rsqrt %89 : vector<16x1xf32>
    %91 = vector.broadcast %90 : vector<16x1xf32> to vector<16x32xf32>
    %92 = arith.mulf %87, %91 : vector<16x32xf32>
    %c0_43 = arith.constant 0 : index
    %c0_44 = arith.constant 0 : index
    %93 = vector.load %arg9[%c0_43, %c0_44] : memref<1x32xf32, #tpu.memory_space<vmem>>, vector<1x32xf32>
    %94 = vector.broadcast %93 : vector<1x32xf32> to vector<16x32xf32>
    %95 = arith.mulf %92, %94 : vector<16x32xf32>
    %c0_45 = arith.constant 0 : index
    %c0_46 = arith.constant 0 : index
    %96 = vector.load %arg10[%c0_45, %c0_46] : memref<1x32xf32, #tpu.memory_space<vmem>>, vector<1x32xf32>
    %97 = vector.broadcast %96 : vector<1x32xf32> to vector<16x32xf32>
    %98 = arith.addf %95, %97 : vector<16x32xf32>
    %99 = arith.truncf %98 : vector<16x32xf32> to vector<16x32xbf16>
    %c0_47 = arith.constant 0 : index
    %c0_48 = arith.constant 0 : index
    %100 = vector.load %arg11[%c0_47, %c0_48] : memref<32x64xbf16, #tpu.memory_space<vmem>>, vector<32x64xbf16>
    %cst_49 = arith.constant dense<0.000000e+00> : vector<16x64xf32>
    %101 = tpu.matmul %99, %100, %cst_49 {dimension_numbers = #tpu.dot_dimension_numbers<[1], [0], [0], [1], [0, 0, 1, 1], [], []>} : vector<16x32xbf16>, vector<32x64xbf16>, vector<16x64xf32> -> vector<16x64xf32>
    %c0_50 = arith.constant 0 : index
    %c0_51 = arith.constant 0 : index
    %102 = vector.load %arg12[%c0_50, %c0_51] : memref<1x64xf32, #tpu.memory_space<vmem>>, vector<1x64xf32>
    %103 = vector.broadcast %102 : vector<1x64xf32> to vector<16x64xf32>
    %104 = arith.addf %101, %103 : vector<16x64xf32>
    %cst_52 = arith.constant 0.000000e+00 : f32
    %105 = vector.broadcast %cst_52 : f32 to vector<16x64xf32>
    %106 = arith.maximumf %104, %105 : vector<16x64xf32>
    %107 = arith.truncf %106 : vector<16x64xf32> to vector<16x64xbf16>
    %c0_53 = arith.constant 0 : index
    %c0_54 = arith.constant 0 : index
    %108 = vector.load %arg13[%c0_53, %c0_54] : memref<64x32xbf16, #tpu.memory_space<vmem>>, vector<64x32xbf16>
    %cst_55 = arith.constant dense<0.000000e+00> : vector<16x32xf32>
    %109 = tpu.matmul %107, %108, %cst_55 {dimension_numbers = #tpu.dot_dimension_numbers<[1], [0], [0], [1], [0, 0, 1, 1], [], []>} : vector<16x64xbf16>, vector<64x32xbf16>, vector<16x32xf32> -> vector<16x32xf32>
    %c0_56 = arith.constant 0 : index
    %c0_57 = arith.constant 0 : index
    %110 = vector.load %arg14[%c0_56, %c0_57] : memref<1x32xf32, #tpu.memory_space<vmem>>, vector<1x32xf32>
    %111 = vector.broadcast %110 : vector<1x32xf32> to vector<16x32xf32>
    %112 = arith.addf %109, %111 : vector<16x32xf32>
    %113 = arith.addf %112, %98 : vector<16x32xf32>
    %cst_58 = arith.constant dense<0.000000e+00> : vector<16xf32>
    %114 = vector.multi_reduction <add>, %113, %cst_58 [1] : vector<16x32xf32> to vector<16xf32>
    %115 = vector.shape_cast %114 : vector<16xf32> to vector<16x1xf32>
    %cst_59 = arith.constant 3.200000e+01 : f32
    %116 = vector.broadcast %cst_59 : f32 to vector<16x1xf32>
    %117 = arith.divf %115, %116 : vector<16x1xf32>
    %118 = vector.broadcast %117 : vector<16x1xf32> to vector<16x32xf32>
    %119 = arith.subf %113, %118 : vector<16x32xf32>
    %120 = arith.mulf %119, %119 : vector<16x32xf32>
    %cst_60 = arith.constant dense<0.000000e+00> : vector<16xf32>
    %121 = vector.multi_reduction <add>, %120, %cst_60 [1] : vector<16x32xf32> to vector<16xf32>
    %122 = vector.shape_cast %121 : vector<16xf32> to vector<16x1xf32>
    %cst_61 = arith.constant 3.200000e+01 : f32
    %123 = vector.broadcast %cst_61 : f32 to vector<16x1xf32>
    %124 = arith.divf %122, %123 : vector<16x1xf32>
    %125 = vector.broadcast %117 : vector<16x1xf32> to vector<16x32xf32>
    %126 = arith.subf %113, %125 : vector<16x32xf32>
    %cst_62 = arith.constant 9.99999997E-7 : f32
    %127 = vector.broadcast %cst_62 : f32 to vector<16x1xf32>
    %128 = arith.addf %124, %127 : vector<16x1xf32>
    %129 = math.rsqrt %128 : vector<16x1xf32>
    %130 = vector.broadcast %129 : vector<16x1xf32> to vector<16x32xf32>
    %131 = arith.mulf %126, %130 : vector<16x32xf32>
    %c0_63 = arith.constant 0 : index
    %c0_64 = arith.constant 0 : index
    %132 = vector.load %arg15[%c0_63, %c0_64] : memref<1x32xf32, #tpu.memory_space<vmem>>, vector<1x32xf32>
    %133 = vector.broadcast %132 : vector<1x32xf32> to vector<16x32xf32>
    %134 = arith.mulf %131, %133 : vector<16x32xf32>
    %c0_65 = arith.constant 0 : index
    %c0_66 = arith.constant 0 : index
    %135 = vector.load %arg16[%c0_65, %c0_66] : memref<1x32xf32, #tpu.memory_space<vmem>>, vector<1x32xf32>
    %136 = vector.broadcast %135 : vector<1x32xf32> to vector<16x32xf32>
    %137 = arith.addf %134, %136 : vector<16x32xf32>
    %138 = vector.shape_cast %137 : vector<16x32xf32> to vector<2x8x32xf32>
    %c0_67 = arith.constant 0 : index
    %c0_68 = arith.constant 0 : index
    %c0_69 = arith.constant 0 : index
    %139 = vector.load %arg17[%c0_67, %c0_68, %c0_69] : memref<2x8x32xf32, #tpu.memory_space<vmem>>, vector<2x8x32xf32>
    tpu.vector_store %arg17[%c0_67, %c0_68, %c0_69], %138 {strides = array<i32>} : memref<2x8x32xf32, #tpu.memory_space<vmem>>, vector<2x8x32xf32>,
    return
  }
  func.func @transform_0(%arg0: i32) -> (i32, i32, i32) {
    %c0_i32 = arith.constant 0 : i32
    %c0_i32_0 = arith.constant 0 : i32
    %c0_i32_1 = arith.constant 0 : i32
    return %arg0, %c0_i32, %c0_i32_0 : i32, i32, i32
  }
  func.func @transform_1(%arg0: i32) -> (i32, i32, i32) {
    %c0_i32 = arith.constant 0 : i32
    %c0_i32_0 = arith.constant 0 : i32
    %c0_i32_1 = arith.constant 0 : i32
    return %arg0, %c0_i32, %c0_i32_0 : i32, i32, i32
  }
  func.func @transform_2(%arg0: i32) -> (i32, i32, i32) {
    %c0_i32 = arith.constant 0 : i32
    %c0_i32_0 = arith.constant 0 : i32
    %c0_i32_1 = arith.constant 0 : i32
    return %arg0, %c0_i32, %c0_i32_0 : i32, i32, i32
  }
  func.func @transform_3(%arg0: i32) -> (i32, i32) {
    %c0_i32 = arith.constant 0 : i32
    %c0_i32_0 = arith.constant 0 : i32
    %c0_i32_1 = arith.constant 0 : i32
    return %c0_i32, %c0_i32_0 : i32, i32
  }
  func.func @transform_4(%arg0: i32) -> (i32, i32) {
    %c0_i32 = arith.constant 0 : i32
    %c0_i32_0 = arith.constant 0 : i32
    %c0_i32_1 = arith.constant 0 : i32
    return %c0_i32, %c0_i32_0 : i32, i32
  }
  func.func @transform_5(%arg0: i32) -> (i32, i32) {
    %c0_i32 = arith.constant 0 : i32
    %c0_i32_0 = arith.constant 0 : i32
    %c0_i32_1 = arith.constant 0 : i32
    return %c0_i32, %c0_i32_0 : i32, i32
  }
  func.func @transform_6(%arg0: i32) -> (i32, i32) {
    %c0_i32 = arith.constant 0 : i32
    %c0_i32_0 = arith.constant 0 : i32
    %c0_i32_1 = arith.constant 0 : i32
    return %c0_i32, %c0_i32_0 : i32, i32
  }
  func.func @transform_7(%arg0: i32) -> (i32, i32) {
    %c0_i32 = arith.constant 0 : i32
    %c0_i32_0 = arith.constant 0 : i32
    %c0_i32_1 = arith.constant 0 : i32
    return %c0_i32, %c0_i32_0 : i32, i32
  }
  func.func @transform_8(%arg0: i32) -> (i32, i32) {
    %c0_i32 = arith.constant 0 : i32
    %c0_i32_0 = arith.constant 0 : i32
    %c0_i32_1 = arith.constant 0 : i32
    return %c0_i32, %c0_i32_0 : i32, i32
  }
  func.func @transform_9(%arg0: i32) -> (i32, i32) {
    %c0_i32 = arith.constant 0 : i32
    %c0_i32_0 = arith.constant 0 : i32
    %c0_i32_1 = arith.constant 0 : i32
    return %c0_i32, %c0_i32_0 : i32, i32
  }
  func.func @transform_10(%arg0: i32) -> (i32, i32) {
    %c0_i32 = arith.constant 0 : i32
    %c0_i32_0 = arith.constant 0 : i32
    %c0_i32_1 = arith.constant 0 : i32
    return %c0_i32, %c0_i32_0 : i32, i32
  }
  func.func @transform_11(%arg0: i32) -> (i32, i32) {
    %c0_i32 = arith.constant 0 : i32
    %c0_i32_0 = arith.constant 0 : i32
    %c0_i32_1 = arith.constant 0 : i32
    return %c0_i32, %c0_i32_0 : i32, i32
  }
  func.func @transform_12(%arg0: i32) -> (i32, i32) {
    %c0_i32 = arith.constant 0 : i32
    %c0_i32_0 = arith.constant 0 : i32
    %c0_i32_1 = arith.constant 0 : i32
    return %c0_i32, %c0_i32_0 : i32, i32
  }
  func.func @transform_13(%arg0: i32) -> (i32, i32) {
    %c0_i32 = arith.constant 0 : i32
    %c0_i32_0 = arith.constant 0 : i32
    %c0_i32_1 = arith.constant 0 : i32
    return %c0_i32, %c0_i32_0 : i32, i32
  }
  func.func @transform_14(%arg0: i32) -> (i32, i32) {
    %c0_i32 = arith.constant 0 : i32
    %c0_i32_0 = arith.constant 0 : i32
    %c0_i32_1 = arith.constant 0 : i32
    return %c0_i32, %c0_i32_0 : i32, i32
  }
  func.func @transform_15(%arg0: i32) -> (i32, i32) {
    %c0_i32 = arith.constant 0 : i32
    %c0_i32_0 = arith.constant 0 : i32
    %c0_i32_1 = arith.constant 0 : i32
    return %c0_i32, %c0_i32_0 : i32, i32
  }
  func.func @transform_16(%arg0: i32) -> (i32, i32, i32) {
    %c0_i32 = arith.constant 0 : i32
    %c0_i32_0 = arith.constant 0 : i32
    %c0_i32_1 = arith.constant 0 : i32
    return %arg0, %c0_i32, %c0_i32_0 : i32, i32, i32
  }
}

</mosaic_0001>

<bundles_post_ra>
// kernel: tpu_custom_call.1
= control target key start
LH: loop header
LB: loop body
LE: loop exit
PB: predicated region body
PF: predicated region fallthrough
CT: control target
= control target key end

     0   :  { %s1412_s0 = inlined_call_operand.hbm [shape: s32[2,1,8], index: 0, kind: input, shape index: {}]   ;;  %s1413_s1 = inlined_call_operand.vmem [shape: f32[2,8,32], index: 1, kind: input, shape index: {}]   ;;  %s1414_s2 = inlined_call_operand.vmem [shape: f32[2,8,32], index: 2, kind: input, shape index: {}]   ;;  %s1415_s3 = inlined_call_operand.vmem [shape: bf16[32,32], index: 3, kind: input, shape index: {}]   ;;  %s1416_s4 = inlined_call_operand.hbm [shape: bf16[32,32], index: 4, kind: input, shape index: {}]   ;;  %s1417_s5 = inlined_call_operand.hbm [shape: bf16[32,32], index: 5, kind: input, shape index: {}]   ;;  %s1418_s6 = inlined_call_operand.hbm [shape: bf16[32,32], index: 6, kind: input, shape index: {}]   ;;  %s1419_s7 = inlined_call_operand.hbm [shape: bf16[32,32], index: 7, kind: input, shape index: {}]   ;;  %s1420_s8 = inlined_call_operand.vmem [shape: f32[1,32], index: 8, kind: input, shape index: {}]   ;;  %s1421_s9 = inlined_call_operand.vmem [shape: f32[1,32], index: 9, kind: input, shape index: {}]   ;;  %s1422_s10 = inlined_call_operand.hbm [shape: bf16[32,64], index: 10, kind: input, shape index: {}]   ;;  %s1423_s11 = inlined_call_operand.vmem [shape: f32[1,64], index: 11, kind: input, shape index: {}]   ;;  %s1424_s12 = inlined_call_operand.vmem [shape: bf16[64,32], index: 12, kind: input, shape index: {}]   ;;  %s1425_s13 = inlined_call_operand.vmem [shape: f32[1,32], index: 13, kind: input, shape index: {}]   ;;  %s1426_s14 = inlined_call_operand.vmem [shape: f32[1,32], index: 14, kind: input, shape index: {}]   ;;  %s1427_s15 = inlined_call_operand.vmem [shape: f32[1,32], index: 15, kind: input, shape index: {}]   ;;  %s1428_s16 = inlined_call_operand.hbm [shape: f32[2,8,32], index: 16, kind: output, shape index: {}]  }
   0x1   :  { %1429 = sst [smem:[#allocation20_spill]] %s1412_s0 }
   0x2   :  { %21 = vsyncpa [#allocation4], 0 }
   0x3   :  { %22 = vsyncpa [#allocation7], 0 }
   0x4   :  { %23 = vsyncpa [#allocation10], 0 }
   0x5   :  { %24 = vsyncpa [#allocation13], 0  ;;  %s49_s23 = sshll.u32 %s1416_s4, 4  ;;  %s50_s23 = int_to_ptr.hbm [resolvable:$true] %s49_s23 }
   0x6   :  { %25 = vsyncpa [#allocation5], 0  ;;  %s1159_s24 = smov [#allocation6]   ;;  %s75_s28 = sshll.u32 %s1418_s6, 4  ;;  %s76_s28 = int_to_ptr.hbm [resolvable:$true] %s75_s28 }
   0x7   :  { %s51_s25 = sshll.u32 %s1159_s24, 4  ;;  %s1160_s29 = smov 64   ;;  %s52_s25 = int_to_ptr.vmem [resolvable:$true] %s51_s25 }
   0x8   :  { %s1161_s30 = smov 4   ;;  %s1162_s0 = smov [#allocation9]  }
   0x9   :  { %57 = dma.hbm_to_vmem [thread:$0]  %s50_s23, 256, %s52_s25, [#allocation7], %s1160_s29, %s1160_s29, %s1161_s30  }
   0xa   :  { %s77_s17 = sshll.u32 %s1162_s0, 4  ;;  %s1430_s19 = sld [smem:[#allocation20_spill]]  ;;  %s78_s17 = int_to_ptr.vmem [resolvable:$true] %s77_s17 }
   0xb   :  { %83 = dma.hbm_to_vmem [thread:$0]  %s76_s28, 256, %s78_s17, [#allocation10], %s1160_s29, %s1160_s29, %s1161_s30  }
   0xc   :  { %s1163_s6 = smov [#allocation3]   ;;  %s62_s23 = sshll.u32 %s1417_s5, 4  ;;  %s63_s23 = int_to_ptr.hbm [resolvable:$true] %s62_s23 }
   0xd   :  { %s32_s21 = sshll.u32 %s1163_s6, 4  ;;  %s1164_s25 = smov 16   ;;  %s33_s21 = int_to_ptr.vmem [resolvable:$true] %s32_s21 }
   0xe   :  { %s1165_s26 = smov 1   ;;  %s1166_s27 = smov [#allocation8]  }
   0xf   :  { %s64_s0 = sshll.u32 %s1166_s27, 4  ;;  %s105_s17 = sshll.u32 %s1422_s10, 4  ;;  %s65_s0 = int_to_ptr.vmem [resolvable:$true] %s64_s0  ;;  %s106_s17 = int_to_ptr.hbm [resolvable:$true] %s105_s17 }
  0x10   :  { %s30_s20 = sshll.u32 %s1430_s19, 4  ;;  %s88_s19 = sshll.u32 %s1419_s7, 4  ;;  %s31_s20 = int_to_ptr.hbm [resolvable:$true] %s30_s20  ;;  %s89_s19 = int_to_ptr.hbm [resolvable:$true] %s88_s19 }
  0x11   :  { %38 = dma.hbm_to_vmem [thread:$0]  %s31_s20, 32, %s33_s21, [#allocation4], %s1164_s25, %s1164_s25, %s1165_s26  }
  0x12   :  { %70 = dma.hbm_to_vmem [thread:$0]  %s63_s23, 256, %s65_s0, [#allocation7], %s1160_s29, %s1160_s29, %s1161_s30  }
  0x13   :  { %s1167_s6 = smov [#allocation11]   ;;  %s1168_s20 = smov [#allocation12]  }
  0x14   :  { %s90_s22 = sshll.u32 %s1167_s6, 4  ;;  %s107_s7 = sshll.u32 %s1168_s20, 4  ;;  %s91_s22 = int_to_ptr.vmem [resolvable:$true] %s90_s22  ;;  %s108_s7 = int_to_ptr.vmem [resolvable:$true] %s107_s7 }
  0x15   :  { %96 = dma.hbm_to_vmem [thread:$0]  %s89_s19, 256, %s91_s22, [#allocation10], %s1160_s29, %s1160_s29, %s1161_s30  }
  0x16   :  { %113 = dma.hbm_to_vmem [thread:$0]  %s106_s17, 256, %s108_s7, [#allocation13], %s1160_s29, %s1160_s29, %s1161_s30  }
  0x17   :  { %1149 = dma.done.wait [#allocation4], 32  }
  0x18   :  { %1150 = vsyncadd [#allocation4], 4294967264 }
  0x19   :  { %1151 = dma.done.wait [#allocation7], 512  }
  0x1a   :  { %1152 = vsyncadd [#allocation7], 4294966784 }
  0x1b   :  { %1153 = dma.done.wait [#allocation10], 512  }
  0x1c   :  { %1154 = vsyncadd [#allocation10], 4294966784 }
  0x1d   :  { %1155 = dma.done.wait [#allocation13], 256  }
  0x1e   :  { %1156 = vsyncadd [#allocation13], 4294967040  ;;  %v917_v0 = vld [vmem:[%s1415_s3 + $0x8] sm:$0xff]  ;;  %v919_v1 = vld [vmem:[#allocation6 + $0x8] sm:$0xff]  ;;  %vm171_vm0 = vcmask 261120   ;;  %vm302_vm1 = vcmask 130048  }
  0x1f   :  { %v916_v2 = vld [vmem:[%s1415_s3] sm:$0xff]  ;;  %v918_v3 = vld [vmem:[#allocation6] sm:$0xff]  ;;  %181 = vmatpush.bf16.msra.mxu0 %v917_v0  ;;  %214 = vmatpush.bf16.msra.mxu1 %v919_v1  ;;  %v923_v30 = vld [vmem:[#allocation9 + $0x8] sm:$0xff]  ;;  %v1170_v40 = vmov 0.0   ;;  %vm341_vm4 = vcmask 64512   ;;  %vm369_vm5 = vcmask 1043456  }
  0x20   :  { %v1304_v4 = vld [vmem:[%s1413_s1] sm:$0xff]  ;;  %v1309_v5 = vld [vmem:[%s1413_s1 + $0x8] sm:$0xff]  ;;  %s1169_s1 = smov 112   ;;  %248 = vmatpush.bf16.msra.mxu2 %v923_v30  ;;  %vm407_vm6 = vcmask 125952   ;;  %vm550_vm7 = vcmask 257152   ;;  %vm733_vm15 = vcmask 523264  }
  0x21   :  { %v152_v6 = vld [vmem:[%s1414_s2] sm:$0xff]  ;;  %v153_v7 = vld [vmem:[%s1414_s2 + $0x8] sm:$0xff]  ;;  %v151_v8 = vpack.c.bf16 %v1309_v5, %v1304_v4  ;;  %s817_s0 = sshll.u32 %s1428_s16, 4  ;;  %s1174_s18 = smov 8   ;;  %s818_s0 = int_to_ptr.hbm [resolvable:$true] %s817_s0 }
  0x22   :  { %v154_v9 = vpack.c.bf16 %v153_v7, %v152_v6  ;;  %v921_v31 = vld [vmem:[#allocation8 + $0x8] sm:$0xff]  ;;  %v922_v34 = vld [vmem:[#allocation9] sm:$0xff]  ;;  %v920_v35 = vld [vmem:[#allocation8] sm:$0xff] }
  0x23   :  { %182 = vmatpush.bf16.msra.mxu0 %v916_v2  ;;  %215 = vmatpush.bf16.msra.mxu1 %v918_v3  ;;  %v290_v36 = vld [vmem:[#allocation3] sm:$0x1]  ;;  %v291_v42 = vld [vmem:[#allocation3 + $0x1] sm:$0x1] }
  0x24   :  { %274 = vmatpush.bf16.msra.mxu3 %v921_v31  ;;  %249 = vmatpush.bf16.msra.mxu2 %v922_v34  ;;  %vm292_vm2 = vcmp.eq.s32.totalorder %v290_v36, 0  ;;  %vm293_vm3 = vcmp.eq.s32.totalorder %v291_v42, 0 }
  0x25   :  { %v294_v41 = vsel %vm292_vm2, -1e+09, %v1170_v40  ;;  %v295_v47 = vsel %vm293_vm3, -1e+09, %v1170_v40 }
  0x26   :  { %841 = vmatmul.msk.bf16.vlgmr.msra.gmra.mxu0 %vm171_vm0, %v151_v8  ;;  %850 = vmatmul.msk.bf16.vlgmr.msra.gmra.mxu1 %vm171_vm0, %v154_v9  ;;  %v298_v43 = vperm.slane %v294_v41, 0  ;;  %v299_v49 = vperm.slane %v295_v47, 0 }
  0x27   :  { %859 = vmatmul.msk.bf16.vlgmr.msra.gmra.mxu2 %vm171_vm0, %v154_v9 }
  0x28   :  { %275 = vmatpush.bf16.msra.mxu3 %v920_v35 }
  0x2b   :  { %868 = vmatmul.msk.bf16.vlgmr.msra.gmra.mxu3 %vm171_vm0, %v151_v8 }
  0xa3   :  { %v184_v10 = vpop.f32.mrf.mxu0  ;;  %v217_v11 = vpop.f32.mrf.mxu1 }
  0xa4   :  { %v282_v12 = vmul.f32 0.25, %v184_v10  ;;  %v286_v13 = vpack.c.bf16 %v217_v11, %v217_v11 }
  0xa6   :  { %v284_v14 = vpack.c.bf16 %v282_v12, %v282_v12  ;;  %v307_v15 = vsel %vm302_vm1, %v286_v13, 0  ;;  %v416_v16 = vunpack.c.l.b16 %v286_v13 }
  0xa7   :  { %316 = vmatpush.bf16.xpose.msrb.mxu0 %v307_v15 }
  0xa8   :  { %v417_v17 = vpack.c.b16 %v416_v16, %v416_v16  ;;  %v411_v18 = vunpack.c.l.b16 %v284_v14 }
  0xaa   :  { %418 = vrot.lane.b32.xlu0 %v417_v17, %s1169_s1  ;;  %v412_v19 = vpack.c.b16 %v411_v18, %v411_v18  ;;  %v251_v11 = vpop.f32.mrf.mxu2 }
  0xab   :  { %v186_v20 = vpop.f32.mrf.mxu0  ;;  %v219_v21 = vpop.f32.mrf.mxu1 }
  0xac   :  { %v283_v22 = vmul.f32 0.25, %v186_v20  ;;  %v287_v23 = vpack.c.bf16 %v219_v21, %v219_v21  ;;  %413 = vrot.lane.b32.xlu1 %v412_v19, %s1169_s1 }
  0xae   :  { %v285_v24 = vpack.c.bf16 %v283_v22, %v283_v22  ;;  %v445_v25 = vunpack.c.l.b16 %v287_v23  ;;  %869 = vmatmul.msk.bf16.vlgmr.msrb.gmra.mxu0 %vm302_vm1, %v284_v14  ;;  %v326_v26 = vsel %vm302_vm1, %v287_v23, 0  ;;  %v277_v12 = vpop.f32.mrf.mxu3 }
  0xaf   :  { %335 = vmatpush.bf16.xpose.msrb.mxu1 %v326_v26  ;;  %v278_v13 = vadd.f32 %v277_v12, %v251_v11 }
  0xb0   :  { %v440_v27 = vunpack.c.l.b16 %v285_v24  ;;  %v446_v28 = vpack.c.b16 %v445_v25, %v445_v25 }
  0xb1   :  { %v288_v14 = vpack.c.bf16 %v278_v13, %v278_v13 }
  0xb2   :  { %v441_v29 = vpack.c.b16 %v440_v27, %v440_v27  ;;  %447 = vrot.lane.b32.xlu0 %v446_v28, %s1169_s1  ;;  %v253_v16 = vpop.f32.mrf.mxu2 }
  0xb3   :  { %v371_v15 = vsel %vm369_vm5, %v288_v14, 0  ;;  %v493_v41 = vunpack.c.l.b16 %v288_v14 }
  0xb4   :  { %442 = vrot.lane.b32.xlu1 %v441_v29, %s1169_s1  ;;  %380 = vmatpush.bf16.msrb.mxu2 %v371_v15 }
  0xb5   :  { %v494_v42 = vpack.c.b16 %v493_v41, %v493_v41 }
  0xb6   :  { %870 = vmatmul.msk.bf16.vlgmr.msrb.gmra.mxu1 %vm302_vm1, %v285_v24  ;;  %v279_v17 = vpop.f32.mrf.mxu3 }
  0xb7   :  { %v280_v18 = vadd.f32 %v279_v17, %v253_v16  ;;  %v1171_v16 = vmov 32.0  }
  0xb9   :  { %v289_v19 = vpack.c.bf16 %v280_v18, %v280_v18 }
  0xbb   :  { %v517_v20 = vunpack.c.l.b16 %v289_v19  ;;  %v390_v21 = vsel %vm369_vm5, %v289_v19, 0 }
  0xbc   :  { %399 = vmatpush.bf16.msrb.mxu3 %v390_v21 }
  0xbd   :  { %v518_v22 = vpack.c.b16 %v517_v20, %v517_v20 }
 0x11c   :  { %v419_v32 = vpop.permute.xlu0 %418 }
 0x11d   :  { %v424_v33 = vsel %vm302_vm1, %v419_v32, 0 }
 0x11e   :  { %433 = vmatpush.bf16.xpose.msra.mxu0 %v424_v33  ;;  %v414_v37 = vpop.permute.xlu1 %413 }
 0x124   :  { %v448_v38 = vpop.permute.xlu0 %447 }
 0x125   :  { %v453_v39 = vsel %vm302_vm1, %v448_v38, 0  ;;  %873 = vmatmul.msk.bf16.vlgmr.msra.gmra.mxu0 %vm302_vm1, %v414_v37 }
 0x126   :  { %462 = vmatpush.bf16.xpose.msra.mxu1 %v453_v39  ;;  %v443_v45 = vpop.permute.xlu1 %442 }
 0x12b   :  { %v318_v44 = vpop.f32.mrf.mxu0 }
 0x12c   :  { %v319_v46 = vadd.f32 %v318_v44, %v298_v43 }
 0x12d   :  { %874 = vmatmul.msk.bf16.vlgmr.msra.gmra.mxu1 %vm302_vm1, %v443_v45 }
 0x12e   :  { %v342_v48 = vsel %vm341_vm4, %v319_v46, -inf }
 0x12f   :  { %343 = vmax.xlane.f32.xlu2 %v342_v48 }
 0x133   :  { %v320_v50 = vpop.f32.mrf.mxu0  ;;  %v337_v51 = vpop.f32.mrf.mxu1 }
 0x134   :  { %v338_v52 = vadd.f32 %v337_v51, %v299_v49 }
 0x136   :  { %v345_v53 = vsel %vm341_vm4, %v338_v52, -inf }
 0x137   :  { %346 = vmax.xlane.f32.xlu2 %v345_v53 }
 0x13b   :  { %v339_v54 = vpop.f32.mrf.mxu1 }
 0x1a2   :  { %v435_v55 = vpop.f32.mrf.mxu0  ;;  %v344_v56 = vpop.xlane.xlu2 %343 }
 0x1a3   :  { %v436_v57 = vadd.f32 %v435_v55, %v298_v43  ;;  %v348_v58 = vsub.f32 %v319_v46, %v344_v56 }
 0x1a5   :  { %v350_v59 = vmul.f32 1.442695, %v348_v58  ;;  %v468_v60 = vsel %vm341_vm4, %v436_v57, -inf }
 0x1a6   :  { %469 = vmax.xlane.f32.xlu0 %v468_v60 }
 0x1a7   :  { %955 = vpow2.f32 %v350_v59 }
 0x1aa   :  { %v437_v61 = vpop.f32.mrf.mxu0  ;;  %v464_v62 = vpop.f32.mrf.mxu1 }
 0x1ab   :  { %v465_v63 = vadd.f32 %v464_v62, %v299_v49  ;;  %v347_v0 = vpop.xlane.xlu2 %346 }
 0x1ac   :  { %v349_v1 = vsub.f32 %v338_v52, %v347_v0 }
 0x1ad   :  { %v956_v2 = vpop.eup %955  ;;  %v471_v3 = vsel %vm341_vm4, %v465_v63, -inf }
 0x1ae   :  { %v352_v6 = vmul.f32 1.442695, %v349_v1  ;;  %472 = vmax.xlane.f32.xlu1 %v471_v3  ;;  %v354_v7 = vsel %vm341_vm4, %v956_v2, 0.0  ;;  %v926_v3 = vld [vmem:[#allocation11 + $0x8] sm:$0xff] }
 0x1af   :  { %355 = vadd.xlane.f32.xlu2 %v354_v7  ;;  %585 = vmatpush.bf16.msrb.mxu0 %v926_v3  ;;  %v951_v3 = vld [vmem:[%s1423_s11] ss:$0 sm:$0xff] }
 0x1b0   :  { %957 = vpow2.f32 %v352_v6  ;;  %v925_v6 = vld [vmem:[#allocation11] sm:$0xff] }
 0x1b2   :  { %v466_v8 = vpop.f32.mrf.mxu1 }
 0x1b3   :  { %586 = vmatpush.bf16.msrb.mxu0 %v925_v6 }
 0x1b6   :  { %v958_v9 = vpop.eup %957 }
 0x1b7   :  { %v357_v10 = vsel %vm341_vm4, %v958_v9, 0.0 }
 0x1b8   :  { %358 = vadd.xlane.f32.xlu2 %v357_v10 }
 0x1ba   :  { %519 = vrot.lane.b32.xlu0 %v518_v22, %s1169_s1 }
 0x219   :  { %v470_v23 = vpop.xlane.xlu0 %469 }
 0x21a   :  { %v474_v24 = vsub.f32 %v436_v57, %v470_v23 }
 0x21c   :  { %v476_v25 = vmul.f32 1.442695, %v474_v24 }
 0x21e   :  { %959 = vpow2.f32 %v476_v25 }
 0x221   :  { %v473_v26 = vpop.xlane.xlu1 %472 }
 0x222   :  { %v475_v27 = vsub.f32 %v465_v63, %v473_v26  ;;  %v356_v28 = vpop.xlane.xlu2 %355 }
 0x223   :  { %961 = vrcp.f32 %v356_v28 }
 0x224   :  { %v960_v29 = vpop.eup %959  ;;  %v478_v30 = vmul.f32 1.442695, %v475_v27 }
 0x225   :  { %v480_v31 = vsel %vm341_vm4, %v960_v29, 0.0 }
 0x226   :  { %963 = vpow2.f32 %v478_v30  ;;  %481 = vadd.xlane.f32.xlu2 %v480_v31  ;;  %v928_v31 = vld [vmem:[#allocation12 + $0x8] sm:$0xff] }
 0x227   :  { %686 = vmatpush.bf16.msrb.mxu1 %v928_v31 }
 0x229   :  { %v962_v32 = vpop.eup %961 }
 0x22a   :  { %v362_v33 = vmul.f32 %v962_v32, %v956_v2 }
 0x22b   :  { %v359_v34 = vpop.xlane.xlu2 %358 }
 0x22c   :  { %v964_v35 = vpop.eup %963  ;;  %965 = vrcp.f32 %v359_v34  ;;  %v364_v36 = vpack.c.bf16 %v362_v33, %v362_v33  ;;  %v520_v43 = vpop.permute.xlu0 %519 }
 0x22d   :  { %v483_v37 = vsel %vm341_vm4, %v964_v35, 0.0  ;;  %v525_v44 = vsel %vm369_vm5, %v520_v43, 0 }
 0x22e   :  { %484 = vadd.xlane.f32.xlu2 %v483_v37  ;;  %871 = vmatmul.msk.bf16.vlgmr.msrb.gmra.mxu2 %vm341_vm4, %v364_v36 }
 0x22f   :  { %534 = vmatpush.bf16.msra.mxu3 %v525_v44 }
 0x232   :  { %v966_v38 = vpop.eup %965 }
 0x233   :  { %v363_v39 = vmul.f32 %v966_v38, %v958_v9 }
 0x235   :  { %v365_v40 = vpack.c.bf16 %v363_v39, %v363_v39 }
 0x237   :  { %872 = vmatmul.msk.bf16.vlgmr.msrb.gmra.mxu3 %vm341_vm4, %v365_v40 }
 0x246   :  { %495 = vrot.lane.b32.xlu2 %v494_v42, %s1169_s1 }
 0x299   :  { %v482_v45 = vpop.xlane.xlu2 %481 }
 0x29a   :  { %967 = vrcp.f32 %v482_v45 }
 0x2a0   :  { %v968_v47 = vpop.eup %967 }
 0x2a1   :  { %v485_v46 = vpop.xlane.xlu2 %484  ;;  %v488_v49 = vmul.f32 %v968_v47, %v960_v29 }
 0x2a2   :  { %969 = vrcp.f32 %v485_v46 }
 0x2a3   :  { %v490_v54 = vpack.c.bf16 %v488_v49, %v488_v49  ;;  %971 = vrcp.f32 %v1171_v16 }
 0x2a8   :  { %v970_v48 = vpop.eup %969 }
 0x2a9   :  { %v489_v50 = vmul.f32 %v970_v48, %v964_v35  ;;  %v496_v51 = vpop.permute.xlu2 %495  ;;  %v972_v17 = vpop.eup %971  ;;  %v927_v35 = vld [vmem:[#allocation12] sm:$0xff] }
 0x2aa   :  { %v501_v52 = vsel %vm369_vm5, %v496_v51, 0  ;;  %v600_v18 = vmul.f32 32.0, %v972_v17  ;;  %vm604_vm8 = vweird.f32 %v972_v17  ;;  %687 = vmatpush.bf16.msrb.mxu1 %v927_v35  ;;  %v949_v51 = vld [vmem:[%s1420_s8] ss:$0 sm:$0xff] }
 0x2ab   :  { %v491_v53 = vpack.c.bf16 %v489_v50, %v489_v50  ;;  %510 = vmatpush.bf16.msra.mxu2 %v501_v52 }
 0x2ac   :  { %v601_v19 = vsub.f32 1.0, %v600_v18 }
 0x2ad   :  { %876 = vmatmul.msk.bf16.vlgmr.msra.gmra.mxu3 %vm341_vm4, %v491_v53 }
 0x2ae   :  { %875 = vmatmul.msk.bf16.vlgmr.msra.gmra.mxu2 %vm341_vm4, %v490_v54  ;;  %v602_v20 = vmul.f32 %v972_v17, %v601_v19 }
 0x2b0   :  { %v603_v21 = vadd.f32 %v972_v17, %v602_v20 }
 0x2b1   :  { %v382_v55 = vpop.f32.mrf.mxu2 }
 0x2b2   :  { %v405_v56 = vpack.c.bf16 %v382_v55, %v382_v55  ;;  %v1360_v22 = vsel %vm604_vm8, %v972_v17, %v603_v21  ;;  %v950_v55 = vld [vmem:[%s1421_s9] ss:$0 sm:$0xff] }
 0x2b4   :  { %408 = vst.msk [vmem:[#allocation2] sm:$0xf] %vm407_vm6, %v405_v56 }
 0x2b9   :  { %v384_v57 = vpop.f32.mrf.mxu2 }
 0x2ba   :  { %v401_v58 = vpop.f32.mrf.mxu3 }
 0x2bb   :  { %v406_v59 = vpack.c.bf16 %v401_v58, %v401_v58 }
 0x2bd   :  { %409 = vst.msk [vmem:[#allocation2 + $0x4] sm:$0xf] %vm407_vm6, %v406_v59 }
 0x2c2   :  { %v403_v60 = vpop.f32.mrf.mxu3 }
 0x330   :  { %v536_v61 = vpop.f32.mrf.mxu3 }
 0x331   :  { %v541_v62 = vpack.c.bf16 %v536_v61, %v536_v61  ;;  %v512_v63 = vpop.f32.mrf.mxu2 }
 0x332   :  { %v540_v0 = vpack.c.bf16 %v512_v63, %v512_v63  ;;  %v931_v63 = vld [vmem:[%s1424_s12 + $0x10] sm:$0xff] }
 0x333   :  { %546 = vrot.lane.b32.xlu2 %v541_v62, %s1164_s25  ;;  %v932_v62 = vld [vmem:[%s1424_s12 + $0x18] sm:$0xff] }
 0x334   :  { %544 = vrot.lane.b32.xlu1 %v540_v0, %s1164_s25  ;;  %741 = vmatpush.bf16.msrb.mxu2 %v932_v62  ;;  %v930_v0 = vld [vmem:[%s1424_s12 + $0x8] sm:$0xff] }
 0x338   :  { %v538_v1 = vpop.f32.mrf.mxu3  ;;  %742 = vmatpush.bf16.msrb.mxu2 %v931_v63 }
 0x339   :  { %v514_v2 = vpop.f32.mrf.mxu2  ;;  %v929_v1 = vld [vmem:[%s1424_s12] sm:$0xff] }
 0x33c   :  { %743 = vmatpush.bf16.msrb.mxu2 %v930_v0 }
 0x340   :  { %744 = vmatpush.bf16.msrb.mxu2 %v929_v1 }
 0x38d   :  { %v547_v7 = vpop.permute.xlu2 %546 }
 0x38e   :  { %552 = vst.msk [vmem:[#allocation2 + $0x4] sm:$0xf] %vm550_vm7, %v547_v7 }
 0x3a6   :  { %v545_v8 = vpop.permute.xlu1 %544 }
 0x3a7   :  { %551 = vst.msk [vmem:[#allocation2] sm:$0xf] %vm550_vm7, %v545_v8 }
 0x3ae   :  { %v924_v9 = vld [vmem:[#allocation2] sm:$0xff] }
 0x3af   :  { %889 = vmatmul.msk.bf16.vlgmr.msrb.gmra.mxu0 %vm171_vm0, %v924_v9 }
 0x42c   :  { %v588_v10 = vpop.f32.mrf.mxu0 }
 0x42d   :  { %v589_v11 = vadd.f32 %v588_v10, %v1304_v4 }
 0x42f   :  { %v593_v12 = vsel %vm171_vm0, %v589_v11, 0.0 }
 0x430   :  { %594 = vadd.xlane.f32.xlu0 %v593_v12  ;;  %v952_v12 = vld [vmem:[%s1425_s13] ss:$0 sm:$0xff] }
 0x434   :  { %v590_v13 = vpop.f32.mrf.mxu0 }
 0x435   :  { %v591_v14 = vadd.f32 %v590_v13, %v1309_v5 }
 0x437   :  { %v596_v15 = vsel %vm171_vm0, %v591_v14, 0.0 }
 0x438   :  { %597 = vadd.xlane.f32.xlu2 %v596_v15 }
 0x4a3   :  { %v595_v4 = vpop.xlane.xlu0 %594 }
 0x4a4   :  { %v606_v23 = vmul.f32 %v1360_v22, %v595_v4 }
 0x4a6   :  { %v608_v24 = vsub.f32 %v589_v11, %v606_v23 }
 0x4a8   :  { %v610_v25 = vmul.f32 %v608_v24, %v608_v24 }
 0x4aa   :  { %v612_v5 = vsel %vm171_vm0, %v610_v25, 0.0 }
 0x4ab   :  { %v598_v26 = vpop.xlane.xlu2 %597  ;;  %613 = vadd.xlane.f32.xlu1 %v612_v5 }
 0x4ac   :  { %v607_v27 = vmul.f32 %v1360_v22, %v598_v26 }
 0x4ae   :  { %v609_v28 = vsub.f32 %v591_v14, %v607_v27 }
 0x4b0   :  { %v611_v29 = vmul.f32 %v609_v28, %v609_v28 }
 0x4b2   :  { %v615_v30 = vsel %vm171_vm0, %v611_v29, 0.0 }
 0x4b3   :  { %616 = vadd.xlane.f32.xlu0 %v615_v30 }
 0x51e   :  { %v614_v32 = vpop.xlane.xlu1 %613 }
 0x51f   :  { %v618_v33 = vmul.f32 %v614_v32, %v1360_v22 }
 0x521   :  { %v620_v34 = vadd.f32 1e-06, %v618_v33 }
 0x523   :  { %973 = vrsqrt.f32 %v620_v34  ;;  %vm628_vm10 = vweird.f32 %v620_v34 }
 0x526   :  { %v617_v36 = vpop.xlane.xlu0 %616 }
 0x527   :  { %v619_v37 = vmul.f32 %v617_v36, %v1360_v22 }
 0x529   :  { %v974_v38 = vpop.eup %973  ;;  %v621_v39 = vadd.f32 1e-06, %v619_v37 }
 0x52a   :  { %v623_v40 = vmul.f32 %v974_v38, %v620_v34  ;;  %vm629_vm9 = vweird.f32 %v974_v38 }
 0x52b   :  { %975 = vrsqrt.f32 %v621_v39  ;;  %vm630_vm11 = vmor %vm628_vm10, %vm629_vm9  ;;  %vm638_vm13 = vweird.f32 %v621_v39 }
 0x52c   :  { %v624_v41 = vmul.f32 %v974_v38, %v623_v40 }
 0x52e   :  { %v625_v42 = vmul.f32 0.5, %v624_v41 }
 0x530   :  { %v626_v43 = vsub.f32 1.5, %v625_v42 }
 0x531   :  { %v976_v44 = vpop.eup %975 }
 0x532   :  { %v627_v45 = vmul.f32 %v974_v38, %v626_v43  ;;  %v633_v46 = vmul.f32 %v976_v44, %v621_v39  ;;  %vm639_vm12 = vweird.f32 %v976_v44 }
 0x533   :  { %vm640_vm14 = vmor %vm638_vm13, %vm639_vm12 }
 0x534   :  { %v634_v47 = vmul.f32 %v976_v44, %v633_v46  ;;  %v631_v48 = vsel %vm630_vm11, %v974_v38, %v627_v45 }
 0x535   :  { %v642_v52 = vmul.f32 %v631_v48, %v608_v24 }
 0x536   :  { %v635_v49 = vmul.f32 0.5, %v634_v47 }
 0x537   :  { %v648_v56 = vmul.f32 %v949_v51, %v642_v52 }
 0x538   :  { %v636_v50 = vsub.f32 1.5, %v635_v49 }
 0x539   :  { %v654_v59 = vadd.f32 %v950_v55, %v648_v56 }
 0x53a   :  { %v637_v53 = vmul.f32 %v976_v44, %v636_v50 }
 0x53c   :  { %v641_v54 = vsel %vm640_vm14, %v976_v44, %v637_v53  ;;  %v953_v44 = vld [vmem:[%s1426_s14] ss:$0 sm:$0xff]  ;;  %s1172_s14 = smov [#allocation14]  }
 0x53d   :  { %v643_v57 = vmul.f32 %v641_v54, %v609_v28  ;;  %s815_s29 = sshll.u32 %s1172_s14, 4  ;;  %s816_s29 = int_to_ptr.vmem [resolvable:$true] %s815_s29 }
 0x53f   :  { %v649_v58 = vmul.f32 %v949_v51, %v643_v57 }
 0x541   :  { %v655_v60 = vadd.f32 %v950_v55, %v649_v58 }
 0x543   :  { %v656_v61 = vpack.c.bf16 %v655_v60, %v654_v59 }
 0x545   :  { %898 = vmatmul.msk.bf16.vlgmr.msrb.gmra.mxu1 %vm171_vm0, %v656_v61 }
 0x5c2   :  { %v689_v2 = vpop.f32.mrf.mxu1 }
 0x5c3   :  { %v690_v6 = vadd.f32 %v951_v3, %v689_v2 }
 0x5c5   :  { %v694_v9 = vmax.f32 %v690_v6, 0.0 }
 0x5ca   :  { %v691_v7 = vpop.f32.mrf.mxu1 }
 0x5cb   :  { %v692_v8 = vadd.f32 %v951_v3, %v691_v7 }
 0x5cd   :  { %v695_v10 = vmax.f32 %v692_v8, 0.0 }
 0x5cf   :  { %v696_v11 = vpack.c.bf16 %v695_v10, %v694_v9 }
 0x5d1   :  { %915 = vmatmul.msk.bf16.vlgmr.msrb.gmra.mxu2 %vm733_vm15, %v696_v11 }
 0x654   :  { %v746_v13 = vpop.f32.mrf.mxu2 }
 0x655   :  { %v747_v14 = vadd.f32 %v952_v12, %v746_v13 }
 0x657   :  { %v751_v15 = vadd.f32 %v747_v14, %v654_v59 }
 0x659   :  { %v753_v16 = vsel %vm171_vm0, %v751_v15, 0.0 }
 0x65a   :  { %754 = vadd.xlane.f32.xlu2 %v753_v16 }
 0x65c   :  { %v748_v17 = vpop.f32.mrf.mxu2 }
 0x65d   :  { %v749_v18 = vadd.f32 %v952_v12, %v748_v17 }
 0x65f   :  { %v752_v19 = vadd.f32 %v749_v18, %v655_v60 }
 0x661   :  { %v756_v20 = vsel %vm171_vm0, %v752_v19, 0.0 }
 0x662   :  { %757 = vadd.xlane.f32.xlu1 %v756_v20 }
 0x6cd   :  { %v755_v21 = vpop.xlane.xlu2 %754 }
 0x6ce   :  { %v759_v4 = vmul.f32 %v755_v21, %v1360_v22 }
 0x6d0   :  { %v761_v23 = vsub.f32 %v751_v15, %v759_v4 }
 0x6d2   :  { %v763_v24 = vmul.f32 %v761_v23, %v761_v23 }
 0x6d4   :  { %v765_v25 = vsel %vm171_vm0, %v763_v24, 0.0 }
 0x6d5   :  { %v758_v5 = vpop.xlane.xlu1 %757  ;;  %766 = vadd.xlane.f32.xlu0 %v765_v25 }
 0x6d6   :  { %v760_v26 = vmul.f32 %v758_v5, %v1360_v22 }
 0x6d8   :  { %v762_v27 = vsub.f32 %v752_v19, %v760_v26 }
 0x6da   :  { %v764_v28 = vmul.f32 %v762_v27, %v762_v27 }
 0x6dc   :  { %v768_v29 = vsel %vm171_vm0, %v764_v28, 0.0 }
 0x6dd   :  { %769 = vadd.xlane.f32.xlu2 %v768_v29 }
 0x748   :  { %v767_v30 = vpop.xlane.xlu0 %766 }
 0x749   :  { %v771_v31 = vmul.f32 %v767_v30, %v1360_v22 }
 0x74b   :  { %v773_v32 = vadd.f32 1e-06, %v771_v31 }
 0x74d   :  { %977 = vrsqrt.f32 %v773_v32  ;;  %vm781_vm2 = vweird.f32 %v773_v32 }
 0x750   :  { %v770_v33 = vpop.xlane.xlu2 %769 }
 0x751   :  { %v772_v34 = vmul.f32 %v770_v33, %v1360_v22  ;;  %v954_v22 = vld [vmem:[%s1427_s15] ss:$0 sm:$0xff]  ;;  %s1173_s15 = smov 128  }
 0x753   :  { %v978_v35 = vpop.eup %977  ;;  %v774_v36 = vadd.f32 1e-06, %v772_v34 }
 0x754   :  { %v776_v37 = vmul.f32 %v978_v35, %v773_v32  ;;  %vm782_vm1 = vweird.f32 %v978_v35 }
 0x755   :  { %979 = vrsqrt.f32 %v774_v36  ;;  %vm783_vm3 = vmor %vm781_vm2, %vm782_vm1  ;;  %vm791_vm5 = vweird.f32 %v774_v36 }
 0x756   :  { %v777_v38 = vmul.f32 %v978_v35, %v776_v37 }
 0x758   :  { %v778_v39 = vmul.f32 0.5, %v777_v38 }
 0x75a   :  { %v779_v40 = vsub.f32 1.5, %v778_v39 }
 0x75b   :  { %v980_v41 = vpop.eup %979 }
 0x75c   :  { %v780_v42 = vmul.f32 %v978_v35, %v779_v40  ;;  %v786_v43 = vmul.f32 %v980_v41, %v774_v36  ;;  %vm792_vm4 = vweird.f32 %v980_v41 }
 0x75d   :  { %vm793_vm6 = vmor %vm791_vm5, %vm792_vm4 }
 0x75e   :  { %v784_v45 = vsel %vm783_vm3, %v978_v35, %v780_v42  ;;  %v787_v46 = vmul.f32 %v980_v41, %v786_v43 }
 0x75f   :  { %v795_v47 = vmul.f32 %v784_v45, %v761_v23 }
 0x760   :  { %v788_v48 = vmul.f32 0.5, %v787_v46 }
 0x761   :  { %v801_v49 = vmul.f32 %v953_v44, %v795_v47 }
 0x762   :  { %v789_v50 = vsub.f32 1.5, %v788_v48 }
 0x763   :  { %v807_v51 = vadd.f32 %v954_v22, %v801_v49 }
 0x764   :  { %v790_v52 = vmul.f32 %v980_v41, %v789_v50 }
 0x765   :  { %809 = vst.msk [vmem:[#allocation14] sm:$0xff] %vm171_vm0, %v807_v51 }
 0x766   :  { %v794_v53 = vsel %vm793_vm6, %v980_v41, %v790_v52 }
 0x767   :  { %v796_v54 = vmul.f32 %v794_v53, %v762_v27 }
 0x769   :  { %v802_v55 = vmul.f32 %v953_v44, %v796_v54 }
 0x76b   :  { %v808_v56 = vadd.f32 %v954_v22, %v802_v55 }
 0x76d   :  { %810 = vst.msk [vmem:[#allocation14 + $0x8] sm:$0xff] %vm171_vm0, %v808_v56 }
 0x76e   :  { %823 = dma.vmem_to_hbm [thread:$0]  %s816_s29, 256, %s818_s0, [#allocation5], %s1173_s15, %s1173_s15, %s1174_s18  }
 0x76f   :  { %1157 = dma.done.wait [#allocation5], 256  }
 0x770   :  { %1158 = vsyncadd [#allocation5], 4294967040 }
 0x771   :  { %828 = vsyncpa [#allocation4], 1 }
 0x772   :  { %829 = vsyncpa [#allocation7], 1 }
 0x773   :  { %830 = vsyncpa [#allocation10], 1 }
 0x774   :  { %831 = vsyncpa [#allocation13], 1 }
 0x775   :  { %832 = vsyncpa [#allocation5], 1 }

</bundles_post_ra>
